<compile_context>
chip_gen: v7x
topology: tpu7x:2x2x1
jax: 0.10.0
libtpu: 0.0.40
codegen_flags: <defaults>
</compile_context>

<pallas_src>
import math
import functools

import jax
import jax.numpy as jnp
from jax import lax
from jax.experimental import pallas as pl
from jax.experimental.pallas import tpu as pltpu


def _mha_kernel(q_ref, k_ref, v_ref, wq_ref, wk_ref, wv_ref, wp_ref,
                out_ref, attn_ref, acc_ref, *, scale):
    """One (batch, head) pair per grid step."""
    h = pl.program_id(1)

    @pl.when(h == 0)
    def _init():
        acc_ref[...] = jnp.zeros_like(acc_ref)

    cdt = q_ref.dtype
    x_q = q_ref[0]            # (seq, emb)
    x_k = k_ref[0]
    x_v = v_ref[0]

    # Per-head input projections. Weight blocks arrive pre-transposed and
    # head-split from the wrapper ((emb, d) / (d, emb)) -> no in-kernel .T,
    # and head selection is done by the BlockSpec index_map (clean DMA slice).
    Qh = jnp.dot(x_q, wq_ref[0], preferred_element_type=jnp.float32).astype(cdt)
    Kh = jnp.dot(x_k, wk_ref[0], preferred_element_type=jnp.float32).astype(cdt)
    Vh = jnp.dot(x_v, wv_ref[0], preferred_element_type=jnp.float32).astype(cdt)

    # Q @ K^T with the contraction on the last dim of both operands
    # (no materialized transpose of K).
    s = lax.dot_general(Qh, Kh, (((1,), (1,)), ((), ())),
                        preferred_element_type=jnp.float32) * scale

    # Max-stabilized softmax; the divide becomes an EUP reciprocal + multiply.
    m = jnp.max(s, axis=-1, keepdims=True)
    e = jnp.exp(s - m)
    denom = jnp.sum(e, axis=-1, keepdims=True)
    a = e * pl.reciprocal(denom, approx=True)

    attn_ref[0, 0] = a.astype(attn_ref.dtype)

    # This head's context and its additive contribution to the output
    # projection:  out = sum_h (a_h @ V_h) @ Wp_h      (no concatenate).
    o_h = jnp.dot(a.astype(cdt), Vh, preferred_element_type=jnp.float32)
    acc_ref[...] += jnp.dot(o_h.astype(wp_ref.dtype), wp_ref[0],
                            preferred_element_type=jnp.float32)

    @pl.when(h == pl.num_programs(1) - 1)
    def _finalize():
        out_ref[0] = acc_ref[...].astype(out_ref.dtype)


def mha_forward(q, k, v, wq, wk, wv, wp, *, heads, compute_dtype=None):
    """MHA forward.  Returns (out [bs,seq,emb], attn [bs,heads,seq,seq])."""
    k = q if k is None else k
    v = q if v is None else v
    bs, seq, emb = q.shape
    assert emb % heads == 0
    d = emb // heads
    out_dtype = q.dtype

    # Pre-transpose nn.Linear weights (out,in) -> (in,out) and split per head
    # OUTSIDE the kernel (one-time XLA op), so the kernel never transposes.
    def split_in_proj(w):                     # (emb, emb) -> (heads, emb, d)
        return jnp.transpose(jnp.asarray(w).T.reshape(emb, heads, d), (1, 0, 2))

    wq_h = split_in_proj(wq)
    wk_h = split_in_proj(wk)
    wv_h = split_in_proj(wv)
    wp_h = jnp.asarray(wp).T.reshape(heads, d, emb)   # per-head rows of Wp.T

    if compute_dtype is not None:             # e.g. bf16 MXU path on v6e/v7x
        q, k, v = (t.astype(compute_dtype) for t in (q, k, v))
        wq_h, wk_h, wv_h, wp_h = (w.astype(compute_dtype)
                                  for w in (wq_h, wk_h, wv_h, wp_h))

    kernel = functools.partial(_mha_kernel, scale=1.0 / math.sqrt(d))

    out_shapes = (
        jax.ShapeDtypeStruct((bs, seq, emb), out_dtype),
        jax.ShapeDtypeStruct((bs, heads, seq, seq), jnp.float32),
    )
    grid_spec = pltpu.PrefetchScalarGridSpec(
        num_scalar_prefetch=0,
        grid=(bs, heads),
        in_specs=[
            pl.BlockSpec((1, seq, emb), lambda b, h: (b, 0, 0)),     # q
            pl.BlockSpec((1, seq, emb), lambda b, h: (b, 0, 0)),     # k
            pl.BlockSpec((1, seq, emb), lambda b, h: (b, 0, 0)),     # v
            pl.BlockSpec((1, emb, d), lambda b, h: (h, 0, 0)),       # Wq head slice
            pl.BlockSpec((1, emb, d), lambda b, h: (h, 0, 0)),       # Wk head slice
            pl.BlockSpec((1, emb, d), lambda b, h: (h, 0, 0)),       # Wv head slice
            pl.BlockSpec((1, d, emb), lambda b, h: (h, 0, 0)),       # Wp head slice
        ],
        out_specs=[
            pl.BlockSpec((1, seq, emb), lambda b, h: (b, 0, 0)),        # out (acc)
            pl.BlockSpec((1, 1, seq, seq), lambda b, h: (b, h, 0, 0)),  # attn tile
        ],
        scratch_shapes=[pltpu.VMEM((seq, emb), jnp.float32)],           # out acc
    )
    return pl.pallas_call(
        kernel,
        out_shape=out_shapes,
        grid_spec=grid_spec,
        compiler_params=pltpu.CompilerParams(
            dimension_semantics=("parallel", "arbitrary")),
    )(q, k, v, wq_h, wk_h, wv_h, wp_h)


def mha_reference(q, k, v, wq, wk, wv, wp, *, heads):
    bs, seq, emb = q.shape
    d = emb // heads
    Q = q @ wq.T
    K = k @ wk.T
    V = v @ wv.T

    def split(T):
        return T.reshape(bs, seq, heads, d).transpose(0, 2, 1, 3)

    Qh, Kh, Vh = split(Q), split(K), split(V)
    attn = jnp.einsum('bhid,bhjd->bhij', Qh, Kh) / math.sqrt(d)
    attn = jax.nn.softmax(attn, axis=-1)
    o = jnp.einsum('bhij,bhjd->bhid', attn, Vh)
    o = o.transpose(0, 2, 1, 3).reshape(bs, seq, emb)
    return o @ wp.T, attn


if __name__ == "__main__":
    bs, seq, emb, heads = 2, 8, 32, 4

    key = jax.random.PRNGKey(0)
    ks = jax.random.split(key, 7)
    q = jax.random.normal(ks[0], (bs, seq, emb), jnp.float32)
    k = jax.random.normal(ks[1], (bs, seq, emb), jnp.float32)
    v = jax.random.normal(ks[2], (bs, seq, emb), jnp.float32)
    # nn.Linear-style weights (out_features, in_features), bias=False
    lim = 1.0 / math.sqrt(emb)
    wq = jax.random.uniform(ks[3], (emb, emb), jnp.float32, -lim, lim)
    wk = jax.random.uniform(ks[4], (emb, emb), jnp.float32, -lim, lim)
    wv = jax.random.uniform(ks[5], (emb, emb), jnp.float32, -lim, lim)
    wp = jax.random.uniform(ks[6], (emb, emb), jnp.float32, -lim, lim)

    out, attn = mha_forward(q, k, v, wq, wk, wv, wp, heads=heads)
    out = jax.block_until_ready(out)
    attn = jax.block_until_ready(attn)

    out_ref, attn_ref = mha_reference(q, k, v, wq, wk, wv, wp, heads=heads)
    assert out.shape == (bs, seq, emb)
    assert attn.shape == (bs, heads, seq, seq)
    # Tolerance accounts for the EUP approximate reciprocal in the softmax.
    assert jnp.allclose(attn, attn_ref, atol=2e-3, rtol=2e-3)
    assert jnp.allclose(out, out_ref, atol=2e-3, rtol=2e-3)

    # TODO(synk): mask / dropout / pre_act / post_act are None in the default
    # module configuration and are not implemented.
    print("KERNEL_OK")
</pallas_src>

<mosaic_0001>
module attributes {stable_mosaic.version = 11 : i64} {
  func.func @_mha_kernel(%arg0: i32, %arg1: i32, %arg2: memref<1x8x32xf32, #tpu.memory_space<vmem>>, %arg3: memref<1x8x32xf32, #tpu.memory_space<vmem>>, %arg4: memref<1x8x32xf32, #tpu.memory_space<vmem>>, %arg5: memref<1x32x8xf32, #tpu.memory_space<vmem>>, %arg6: memref<1x32x8xf32, #tpu.memory_space<vmem>>, %arg7: memref<1x32x8xf32, #tpu.memory_space<vmem>>, %arg8: memref<1x8x32xf32, #tpu.memory_space<vmem>>, %arg9: memref<1x8x32xf32, #tpu.memory_space<vmem>>, %arg10: memref<1x1x8x8xf32, #tpu.memory_space<vmem>>, %arg11: memref<8x32xf32, #tpu.memory_space<vmem>>) attributes {dimension_semantics = [#tpu.dimension_semantics<parallel>, #tpu.dimension_semantics<arbitrary>], iteration_bounds = array<i64: 2, 4>, scalar_prefetch = 0 : i64, scratch_operands = 1 : i64, tpu.core_type = #tpu.core_type<tc>, window_params = [{transform_indices = @transform_0, window_bounds = array<i64: 1, 8, 32>}, {transform_indices = @transform_1, window_bounds = array<i64: 1, 8, 32>}, {transform_indices = @transform_2, window_bounds = array<i64: 1, 8, 32>}, {transform_indices = @transform_3, window_bounds = array<i64: 1, 32, 8>}, {transform_indices = @transform_4, window_bounds = array<i64: 1, 32, 8>}, {transform_indices = @transform_5, window_bounds = array<i64: 1, 32, 8>}, {transform_indices = @transform_6, window_bounds = array<i64: 1, 8, 32>}, {transform_indices = @transform_7, window_bounds = array<i64: 1, 8, 32>}, {transform_indices = @transform_8, window_bounds = array<i64: 1, 1, 8, 8>}]} {
    %c0_i32 = arith.constant 0 : i32
    %0 = arith.cmpi eq, %arg1, %c0_i32 : i32
    %1 = arith.extui %0 : i1 to i32
    %c0_i32_0 = arith.constant 0 : i32
    %2 = arith.cmpi ne, %1, %c0_i32_0 : i32
    scf.if %2 {
      %cst_38 = arith.constant 0.000000e+00 : f32
      %44 = vector.broadcast %cst_38 : f32 to vector<8x32xf32>
      %c0_39 = arith.constant 0 : index
      %c0_40 = arith.constant 0 : index
      %45 = vector.load %arg11[%c0_39, %c0_40] : memref<8x32xf32, #tpu.memory_space<vmem>>, vector<8x32xf32>
      tpu.vector_store %arg11[%c0_39, %c0_40], %44 {strides = array<i32>} : memref<8x32xf32, #tpu.memory_space<vmem>>, vector<8x32xf32>,
    } else {
    }
    %c0 = arith.constant 0 : index
    %c0_1 = arith.constant 0 : index
    %c0_2 = arith.constant 0 : index
    %3 = vector.load %arg2[%c0, %c0_1, %c0_2] : memref<1x8x32xf32, #tpu.memory_space<vmem>>, vector<1x8x32xf32>
    %4 = vector.shape_cast %3 : vector<1x8x32xf32> to vector<8x32xf32>
    %c0_3 = arith.constant 0 : index
    %c0_4 = arith.constant 0 : index
    %c0_5 = arith.constant 0 : index
    %5 = vector.load %arg3[%c0_3, %c0_4, %c0_5] : memref<1x8x32xf32, #tpu.memory_space<vmem>>, vector<1x8x32xf32>
    %6 = vector.shape_cast %5 : vector<1x8x32xf32> to vector<8x32xf32>
    %c0_6 = arith.constant 0 : index
    %c0_7 = arith.constant 0 : index
    %c0_8 = arith.constant 0 : index
    %7 = vector.load %arg4[%c0_6, %c0_7, %c0_8] : memref<1x8x32xf32, #tpu.memory_space<vmem>>, vector<1x8x32xf32>
    %8 = vector.shape_cast %7 : vector<1x8x32xf32> to vector<8x32xf32>
    %c0_9 = arith.constant 0 : index
    %c0_10 = arith.constant 0 : index
    %c0_11 = arith.constant 0 : index
    %9 = vector.load %arg5[%c0_9, %c0_10, %c0_11] : memref<1x32x8xf32, #tpu.memory_space<vmem>>, vector<1x32x8xf32>
    %10 = vector.shape_cast %9 : vector<1x32x8xf32> to vector<32x8xf32>
    %cst = arith.constant dense<0.000000e+00> : vector<8x8xf32>
    %11 = tpu.matmul %4, %10, %cst {dimension_numbers = #tpu.dot_dimension_numbers<[1], [0], [0], [1], [0, 0, 1, 1], [], []>} : vector<8x32xf32>, vector<32x8xf32>, vector<8x8xf32> -> vector<8x8xf32>
    %c0_12 = arith.constant 0 : index
    %c0_13 = arith.constant 0 : index
    %c0_14 = arith.constant 0 : index
    %12 = vector.load %arg6[%c0_12, %c0_13, %c0_14] : memref<1x32x8xf32, #tpu.memory_space<vmem>>, vector<1x32x8xf32>
    %13 = vector.shape_cast %12 : vector<1x32x8xf32> to vector<32x8xf32>
    %cst_15 = arith.constant dense<0.000000e+00> : vector<8x8xf32>
    %14 = tpu.matmul %6, %13, %cst_15 {dimension_numbers = #tpu.dot_dimension_numbers<[1], [0], [0], [1], [0, 0, 1, 1], [], []>} : vector<8x32xf32>, vector<32x8xf32>, vector<8x8xf32> -> vector<8x8xf32>
    %c0_16 = arith.constant 0 : index
    %c0_17 = arith.constant 0 : index
    %c0_18 = arith.constant 0 : index
    %15 = vector.load %arg7[%c0_16, %c0_17, %c0_18] : memref<1x32x8xf32, #tpu.memory_space<vmem>>, vector<1x32x8xf32>
    %16 = vector.shape_cast %15 : vector<1x32x8xf32> to vector<32x8xf32>
    %cst_19 = arith.constant dense<0.000000e+00> : vector<8x8xf32>
    %17 = tpu.matmul %8, %16, %cst_19 {dimension_numbers = #tpu.dot_dimension_numbers<[1], [0], [0], [1], [0, 0, 1, 1], [], []>} : vector<8x32xf32>, vector<32x8xf32>, vector<8x8xf32> -> vector<8x8xf32>
    %cst_20 = arith.constant dense<0.000000e+00> : vector<8x8xf32>
    %18 = tpu.matmul %11, %14, %cst_20 {dimension_numbers = #tpu.dot_dimension_numbers<[1], [1], [0], [0], [0, 0, 1, 0], [], []>} : vector<8x8xf32>, vector<8x8xf32>, vector<8x8xf32> -> vector<8x8xf32>
    %cst_21 = arith.constant 0.353553385 : f32
    %19 = vector.broadcast %cst_21 : f32 to vector<8x8xf32>
    %20 = arith.mulf %18, %19 : vector<8x8xf32>
    %cst_22 = arith.constant dense<0xFF800000> : vector<8xf32>
    %21 = vector.multi_reduction <maximumf>, %20, %cst_22 [1] : vector<8x8xf32> to vector<8xf32>
    %22 = vector.shape_cast %21 : vector<8xf32> to vector<8x1xf32>
    %23 = vector.broadcast %22 : vector<8x1xf32> to vector<8x8xf32>
    %24 = arith.subf %20, %23 : vector<8x8xf32>
    %25 = math.exp %24 : vector<8x8xf32>
    %cst_23 = arith.constant dense<0.000000e+00> : vector<8xf32>
    %26 = vector.multi_reduction <add>, %25, %cst_23 [1] : vector<8x8xf32> to vector<8xf32>
    %27 = vector.shape_cast %26 : vector<8xf32> to vector<8x1xf32>
    %28 = tpu.reciprocal %27 {approx = true} : vector<8x1xf32> -> vector<8x1xf32>
    %29 = vector.broadcast %28 : vector<8x1xf32> to vector<8x8xf32>
    %30 = arith.mulf %25, %29 : vector<8x8xf32>
    %c0_24 = arith.constant 0 : index
    %c0_25 = arith.constant 0 : index
    %c0_26 = arith.constant 0 : index
    %c0_27 = arith.constant 0 : index
    %31 = vector.load %arg10[%c0_24, %c0_25, %c0_26, %c0_27] : memref<1x1x8x8xf32, #tpu.memory_space<vmem>>, vector<1x1x8x8xf32>
    %32 = vector.shape_cast %31 : vector<1x1x8x8xf32> to vector<8x8xf32>
    %33 = vector.shape_cast %30 : vector<8x8xf32> to vector<1x1x8x8xf32>
    tpu.vector_store %arg10[%c0_24, %c0_25, %c0_26, %c0_27], %33 {strides = array<i32>} : memref<1x1x8x8xf32, #tpu.memory_space<vmem>>, vector<1x1x8x8xf32>,
    %cst_28 = arith.constant dense<0.000000e+00> : vector<8x8xf32>
    %34 = tpu.matmul %30, %17, %cst_28 {dimension_numbers = #tpu.dot_dimension_numbers<[1], [0], [0], [1], [0, 0, 1, 1], [], []>} : vector<8x8xf32>, vector<8x8xf32>, vector<8x8xf32> -> vector<8x8xf32>
    %c0_29 = arith.constant 0 : index
    %c0_30 = arith.constant 0 : index
    %35 = vector.load %arg11[%c0_29, %c0_30] : memref<8x32xf32, #tpu.memory_space<vmem>>, vector<8x32xf32>
    %c0_31 = arith.constant 0 : index
    %c0_32 = arith.constant 0 : index
    %c0_33 = arith.constant 0 : index
    %36 = vector.load %arg8[%c0_31, %c0_32, %c0_33] : memref<1x8x32xf32, #tpu.memory_space<vmem>>, vector<1x8x32xf32>
    %37 = vector.shape_cast %36 : vector<1x8x32xf32> to vector<8x32xf32>
    %cst_34 = arith.constant dense<0.000000e+00> : vector<8x32xf32>
    %38 = tpu.matmul %34, %37, %cst_34 {dimension_numbers = #tpu.dot_dimension_numbers<[1], [0], [0], [1], [0, 0, 1, 1], [], []>} : vector<8x8xf32>, vector<8x32xf32>, vector<8x32xf32> -> vector<8x32xf32>
    %39 = arith.addf %35, %38 : vector<8x32xf32>
    %c0_35 = arith.constant 0 : index
    %c0_36 = arith.constant 0 : index
    %40 = vector.load %arg11[%c0_35, %c0_36] : memref<8x32xf32, #tpu.memory_space<vmem>>, vector<8x32xf32>
    tpu.vector_store %arg11[%c0_35, %c0_36], %39 {strides = array<i32>} : memref<8x32xf32, #tpu.memory_space<vmem>>, vector<8x32xf32>,
    %c3_i32 = arith.constant 3 : i32
    %41 = arith.cmpi eq, %arg1, %c3_i32 : i32
    %42 = arith.extui %41 : i1 to i32
    %c0_i32_37 = arith.constant 0 : i32
    %43 = arith.cmpi ne, %42, %c0_i32_37 : i32
    scf.if %43 {
      %c0_38 = arith.constant 0 : index
      %c0_39 = arith.constant 0 : index
      %44 = vector.load %arg11[%c0_38, %c0_39] : memref<8x32xf32, #tpu.memory_space<vmem>>, vector<8x32xf32>
      %c0_40 = arith.constant 0 : index
      %c0_41 = arith.constant 0 : index
      %c0_42 = arith.constant 0 : index
      %45 = vector.load %arg9[%c0_40, %c0_41, %c0_42] : memref<1x8x32xf32, #tpu.memory_space<vmem>>, vector<1x8x32xf32>
      %46 = vector.shape_cast %45 : vector<1x8x32xf32> to vector<8x32xf32>
      %47 = vector.shape_cast %44 : vector<8x32xf32> to vector<1x8x32xf32>
      tpu.vector_store %arg9[%c0_40, %c0_41, %c0_42], %47 {strides = array<i32>} : memref<1x8x32xf32, #tpu.memory_space<vmem>>, vector<1x8x32xf32>,
    } else {
    }
    return
  }
  func.func @transform_0(%arg0: i32, %arg1: i32) -> (i32, i32, i32) {
    %c0_i32 = arith.constant 0 : i32
    %c0_i32_0 = arith.constant 0 : i32
    %c0_i32_1 = arith.constant 0 : i32
    return %arg0, %c0_i32, %c0_i32_0 : i32, i32, i32
  }
  func.func @transform_1(%arg0: i32, %arg1: i32) -> (i32, i32, i32) {
    %c0_i32 = arith.constant 0 : i32
    %c0_i32_0 = arith.constant 0 : i32
    %c0_i32_1 = arith.constant 0 : i32
    return %arg0, %c0_i32, %c0_i32_0 : i32, i32, i32
  }
  func.func @transform_2(%arg0: i32, %arg1: i32) -> (i32, i32, i32) {
    %c0_i32 = arith.constant 0 : i32
    %c0_i32_0 = arith.constant 0 : i32
    %c0_i32_1 = arith.constant 0 : i32
    return %arg0, %c0_i32, %c0_i32_0 : i32, i32, i32
  }
  func.func @transform_3(%arg0: i32, %arg1: i32) -> (i32, i32, i32) {
    %c0_i32 = arith.constant 0 : i32
    %c0_i32_0 = arith.constant 0 : i32
    %c0_i32_1 = arith.constant 0 : i32
    return %arg1, %c0_i32, %c0_i32_0 : i32, i32, i32
  }
  func.func @transform_4(%arg0: i32, %arg1: i32) -> (i32, i32, i32) {
    %c0_i32 = arith.constant 0 : i32
    %c0_i32_0 = arith.constant 0 : i32
    %c0_i32_1 = arith.constant 0 : i32
    return %arg1, %c0_i32, %c0_i32_0 : i32, i32, i32
  }
  func.func @transform_5(%arg0: i32, %arg1: i32) -> (i32, i32, i32) {
    %c0_i32 = arith.constant 0 : i32
    %c0_i32_0 = arith.constant 0 : i32
    %c0_i32_1 = arith.constant 0 : i32
    return %arg1, %c0_i32, %c0_i32_0 : i32, i32, i32
  }
  func.func @transform_6(%arg0: i32, %arg1: i32) -> (i32, i32, i32) {
    %c0_i32 = arith.constant 0 : i32
    %c0_i32_0 = arith.constant 0 : i32
    %c0_i32_1 = arith.constant 0 : i32
    return %arg1, %c0_i32, %c0_i32_0 : i32, i32, i32
  }
  func.func @transform_7(%arg0: i32, %arg1: i32) -> (i32, i32, i32) {
    %c0_i32 = arith.constant 0 : i32
    %c0_i32_0 = arith.constant 0 : i32
    %c0_i32_1 = arith.constant 0 : i32
    return %arg0, %c0_i32, %c0_i32_0 : i32, i32, i32
  }
  func.func @transform_8(%arg0: i32, %arg1: i32) -> (i32, i32, i32, i32) {
    %c0_i32 = arith.constant 0 : i32
    %c0_i32_0 = arith.constant 0 : i32
    %c0_i32_1 = arith.constant 0 : i32
    return %arg0, %arg1, %c0_i32, %c0_i32_0 : i32, i32, i32, i32
  }
}

</mosaic_0001>

<bundles_post_ra>
// kernel: tpu_custom_call.1
= control target key start
LH: loop header
LB: loop body
LE: loop exit
PB: predicated region body
PF: predicated region fallthrough
CT: control target
= control target key end

     0   :  { %s1870_s0 = inlined_call_operand.vmem [shape: f32[2,8,32], index: 0, kind: input, shape index: {}]   ;;  %s1871_s1 = inlined_call_operand.vmem [shape: f32[2,8,32], index: 1, kind: input, shape index: {}]   ;;  %s1872_s2 = inlined_call_operand.vmem [shape: f32[2,8,32], index: 2, kind: input, shape index: {}]   ;;  %s1873_s3 = inlined_call_operand.vmem [shape: f32[4,32,8], index: 3, kind: input, shape index: {}]   ;;  %s1874_s4 = inlined_call_operand.vmem [shape: f32[4,32,8], index: 4, kind: input, shape index: {}]   ;;  %s1875_s5 = inlined_call_operand.vmem [shape: f32[4,32,8], index: 5, kind: input, shape index: {}]   ;;  %s1876_s6 = inlined_call_operand.vmem [shape: f32[4,8,32], index: 6, kind: input, shape index: {}]   ;;  %s1877_s7 = inlined_call_operand.hbm [shape: f32[2,8,32], index: 7, kind: output, shape index: {0}]   ;;  %s1878_s8 = inlined_call_operand.hbm [shape: f32[2,4,8,8], index: 8, kind: output, shape index: {1}]  }
   0x1   :  { %1898 = sst [smem:[#allocation24_spill]] %s1877_s7 }
   0x2   :  { %1899 = sst [smem:[#allocation25_spill]] %s1878_s8 }
   0x3   :  { %14 = vsyncpa [#allocation4], 0 }
   0x4   :  { %16 = vsyncpa [#allocation4 + $0x1], 0 }
   0x5   :  { %17 = vsyncpa [#allocation6], 0 }
   0x6   :  { %19 = vsyncpa [#allocation6 + $0x1], 0  ;;  %s1568_s27 = smov 0   ;;  %s1570_s28 = smov 0  }
   0x7   :  { %s1572_s29 = smov 0   ;;  %s1574_s30 = smov 0  }
   0x8   :  { %s1576_s9 = smov 0   ;;  %s1578_s10 = smov 0  }
   0x9   :  { %s1580_s11 = smov 0   ;;  %s1582_s12 = smov 0  }
   0xa   :  { %s1584_s13 = smov 0   ;;  %s1586_s14 = smov 0  }
   0xb   :  { %s1588_s15 = smov 0  }
   0xc LB: > { %1900 = sst [smem:[#allocation9_spill]] %s1475_s27  ;;  %s1134_s16 = sadd.s32 4294967295, %s1515_s15   ;;  %s1515_s15 = sphi %s1588_s15, %s25_s15   ;;  %s1511_s14 = sphi %s1586_s14, %s1944_s14   ;;  %s1507_s13 = sphi %s1584_s13, %s1943_s13   ;;  %s1503_s12 = sphi %s1582_s12, %s1942_s12   ;;  %s1499_s11 = sphi %s1580_s11, %s1941_s11   ;;  %s1495_s10 = sphi %s1578_s10, %s1940_s10   ;;  %s1491_s9 = sphi %s1576_s9, %s1946_s9   ;;  %s1487_s30 = sphi %s1574_s30, %s1945_s30   ;;  %s1483_s29 = sphi %s1572_s29, %s1938_s29   ;;  %s1479_s28 = sphi %s1570_s28, %s1937_s28   ;;  %s1475_s27 = sphi %s1568_s27, %s1936_s27  }
   0xd   : > { %1901 = sst [smem:[#allocation10_spill]] %s1479_s28  ;;  %s1135_s17 = sadd.s32 4294967294, %s1515_s15  }
   0xe   : > { %1902 = sst [smem:[#allocation11_spill]] %s1483_s29  ;;  %s34_s18 = sadd.s32 1, %s1507_s13 }
   0xf   : > { %1903 = sst [smem:[#allocation12_spill]] %s1487_s30  ;;  %s37_s19 = sadd.s32 1, %s1511_s14 }
  0x10   : > { %1904 = sst [smem:[#allocation13_spill]] %s1495_s10  ;;  %p35_p0 = scmp.ge.s32.totalorder %s34_s18, 4 }
  0x11   : > { %1905 = sst [smem:[#allocation14_spill]] %s1507_s13  ;;  %s226_s20 = sadd.s32 1, %s1495_s10 }
  0x12   : > { %1906 = sst [smem:[#allocation15_spill]] %s1511_s14  ;;  %p236_p1 = scmp.ne.s32.totalorder %s1495_s10, %s1491_s9 }
  0x13   : > { %1907 = sst [smem:[#allocation16_spill]] %s1515_s15  ;;  %p1630_p2 = scmp.eq.s32.totalorder %s1134_s16, 7 }
  0x14   : > { %s1948_s18 = smov (%p35_p0, %s34_s18), 0  ;;  %s1950_s19 = smov (!%p35_p0, %s37_s19), %s1511_s14 }
  0x15   : > { %1909 = sst [smem:[#allocation17_spill]] %s1948_s18  ;;  %p1639_p3 = por %p1630_p2, %p236_p1 }
  0x16   : > { %p242_p4 = scmp.ne.s32.totalorder %s1491_s9, %s1487_s30  ;;  %p39_p5 = scmp.ge.s32.totalorder %s1950_s19, 2 }
  0x17   : > { %p1645_p6 = scmp.eq.s32.totalorder %s1135_s17, 7  ;;  %s250_s24 = ssub.s32 %s1507_s13, %s1948_s18 }
  0x18   : > { %s254_s25 = sadd.s32 1, %s1483_s29  ;;  %s1952_s19 = smov (%p39_p5, %s1950_s19), 0 }
  0x19   : > { %1912 = sst [smem:[#allocation18_spill]] %s1952_s19  ;;  %p1656_p7 = por %p1645_p6, %p242_p4 }
  0x1a   : > { %p264_p8 = scmp.ne.s32.totalorder %s1483_s29, %s1479_s28  ;;  %s223_s16 = ssub.s32 %s1511_s14, %s1952_s19 }
  0x1b   : > { %s1913_s26 = scalar_select %p1656_p7, 1, 0 }
  0x1c   : > { %p270_p9 = scmp.ne.s32.totalorder %s1479_s28, %s1475_s27  ;;  %p224_p10 = scmp.eq.s32.totalorder %s223_s16, 0 }
  0x1d   : > { %1914 = sst [smem:[#allocation19_spill]] %s1913_s26  ;;  %s251_s17 = sor.u32 %s250_s24, %s223_s16 }
  0x1e   : > { %p252_p11 = scmp.eq.s32.totalorder %s251_s17, 0  ;;  %p1668_p12 = por %p264_p8, %p1630_p2 }
  0x1f   : > { %s1673_s18 = scalar_select %p224_p10, %s1495_s10, %s226_s20  }
  0x20   : > { %s1915_s30 = scalar_select %p1668_p12, 1, 0 }
  0x21   : > { %1917 = sst [smem:[#allocation21_spill]] %s1673_s18  ;;  %p1680_p13 = por %p270_p9, %p1645_p6 }
  0x22   : > { %1916 = sst [smem:[#allocation20_spill]] %s1915_s30  ;;  %p1138_p0 = scmp.ge.s32.totalorder %s1515_s15, 1 }
  0x23   : > { %s1676_s13 = scalar_select %p252_p11, %s1483_s29, %s254_s25  }
  0x24   : > { %s1919_s8 = scalar_select %p1680_p13, 1, 0 }
  0x25   : > { %1918 = sst [smem:[#allocation22_spill]] %s1676_s13  ;;  %p341_p1 = scmp.lt.s32.totalorder %s1515_s15, 9 }
  0x26   : > { %1920 = sst [smem:[#allocation23_spill]] %s1919_s8 }
  0x27   : > { %p342_p4 = pnand %p1138_p0, %p341_p1 }
  0x28   : > { %s1885_s20 = sand.u32 (!%p342_p4), 1, %s1491_s9   ;;  %s1887_s21 = sand.u32 (!%p342_p4), 1, %s1479_s28  }
  0x29   : > { %345 = sbr.rel (%p342_p4) target bundleno = 1297 (0x511), region = 48  ;;  %s1690_s23 = sshll.u32 (!%p342_p4), %s1885_s20, 3 }
  0x2a   : > { %s1694_s24 = sshll.u32 (!%p342_p4), %s1887_s21, 3  ;;  %p406_p2 = scmp.lt.s32.totalorder (!%p342_p4), %s1503_s12, 1 }
  0x2b   : > { %p418_p5 = scmp.lt.s32.totalorder (!%p342_p4), %s1499_s11, 3  ;;  %s398_s21 = scalar_lea.vmem (!%p342_p4), [#allocation3], %s1690_s23 }
  0x2c   : > { %s405_s8 = scalar_lea.vmem (!%p342_p4), [#allocation5], %s1694_s24  ;;  %p1151_p6 = scmp.ne.s32.totalorder (!%p342_p4), %s1499_s11, 0 }
  0x30   : > { %s407_s25 = scalar_select %p406_p2, %s1503_s12, 1 }
  0x31   : > { %s419_s16 = scalar_select %p418_p5, %s1499_s11, 3 }
  0x32   : > { %s1700_s17 = sshll.u32 %s407_s25, 3  ;;  %440 = sbr.rel (%p1151_p6) target bundleno = 57 (0x39), region = 52  ;;  %vm441_vm0 = vcmask (!%p1151_p6), 261120   ;;  %v1517_v0 = vmov (!%p1151_p6), 0.0  }
  0x33   : > { %s1167_s27 = sshll.u32 %s419_s16, 5  ;;  %s1150_s10 = sshll.u32 %s419_s16, 3  ;;  %442 = vst.msk [vmem:[#allocation2] sm:$0xff] (!%p1151_p6), %vm441_vm0, %v1517_v0 }
  0x34   : > { %s422_s25 = scalar_lea.vmem %s1873_s3, %s1167_s27  ;;  %s427_s14 = scalar_lea.vmem %s1874_s4, %s1167_s27 }
  0x35   : > { %s1723_s18 = scalar_lea.vmem %s1875_s5, %s1167_s27  ;;  %s1728_s29 = scalar_lea.vmem %s1876_s6, %s1150_s10 }
  0x39 PF: > { %v524_v1 = vld [vmem:[%s427_s14] sm:$0xff]  ;;  %v525_v2 = vld [vmem:[%s427_s14 + $0x8] sm:$0xff]  ;;  %v1518_v4 = vmov 0.0|0.0   ;;  %v526_v7 = vld [vmem:[%s427_s14 + $0x10] sm:$0xff]  ;;  %vm1519_vm1 = vmmov 0   ;;  %v1520_v10 = vmov 0.0   ;;  %s1921_s28 = scalar_lea.vmem %s1871_s1, %s1700_s17  ;;  %s1922_s15 = scalar_lea.vmem %s1870_s0, %s1700_s17 }
  0x3a   : > { %v446_v3 = vld [vmem:[%s422_s25] sm:$0xff]  ;;  %1245 = vmatprep.subr.bf16.mxu1 %v1518_v4  ;;  %v1246_v5 = vpack.c.bf16 %v525_v2, %v524_v1  ;;  %1239 = vmatprep.subr.bf16.mxu0 %v1518_v4  ;;  %v447_v6 = vld [vmem:[%s422_s25 + $0x8] sm:$0xff]  ;;  %v527_v8 = vld [vmem:[%s427_s14 + $0x18] sm:$0xff]  ;;  %vm450_vm2 = vcmask 261120   ;;  %vm678_vm3 = vcmask 64512   ;;  %p1159_p8 = scmp.ne.s32.totalorder %s1499_s11, 3 }
  0x3b   : > { %v1240_v9 = vpack.c.bf16 %v447_v6, %v446_v3  ;;  %1210 = vmatprep.mubr.msk.f32.mxu1 %vm1519_vm1, %v1520_v10  ;;  %v448_v11 = vld [vmem:[%s422_s25 + $0x10] sm:$0xff]  ;;  %v449_v12 = vld [vmem:[%s422_s25 + $0x18] sm:$0xff]  ;;  %1199 = vmatprep.mubr.msk.f32.mxu0 %vm1519_vm1, %v1520_v10  ;;  %v1249_v13 = vpack.c.bf16 %v527_v8, %v526_v7  ;;  %v444_v15 = vld [vmem:[%s1921_s28] sm:$0xff]  ;;  %s1923_s25 = scalar_lea.vmem %s1872_s2, %s1700_s17 }
  0x3c   : > { %1247 = vmatpush3.bf16.msra.mxu1 %v1246_v5  ;;  %v1243_v14 = vpack.c.bf16 %v449_v12, %v448_v11  ;;  %v443_v16 = vld [vmem:[%s1922_s15] sm:$0xff]  ;;  %v602_v22 = vld [vmem:[%s1723_s18 + $0x8] sm:$0xff]  ;;  %v603_v23 = vld [vmem:[%s1723_s18 + $0x10] sm:$0xff] }
  0x3d   : > { %1241 = vmatpush3.bf16.msra.mxu0 %v1240_v9  ;;  %1248 = vmatprep.subr.bf16.mxu1 %v1518_v4  ;;  %v601_v21 = vld [vmem:[%s1723_s18] sm:$0xff]  ;;  %v604_v25 = vld [vmem:[%s1723_s18 + $0x18] sm:$0xff] }
  0x3e   : > { %1242 = vmatprep.subr.bf16.mxu0 %v1518_v4  ;;  %v1252_v24 = vpack.c.bf16 %v602_v22, %v601_v21  ;;  %v1255_v26 = vpack.c.bf16 %v604_v25, %v603_v23  ;;  %v445_v27 = vld [vmem:[%s1923_s25] sm:$0xff] }
  0x3f   : > { %v842_v39 = vld [vmem:[%s1728_s29] sm:$0xff] }
  0x40   : > { %1250 = vmatpush3.bf16.msra.mxu1 %v1249_v13  ;;  %v841_v45 = vld [vmem:[#allocation2] sm:$0xff] }
  0x41   : > { %1244 = vmatpush3.bf16.msra.mxu0 %v1243_v14  ;;  %1224 = vmatprep.subr.mxu1 %v1520_v10 }
  0x42   : > { %1251 = vmatprep.subr.bf16.mxu0 %v1518_v4 }
  0x43   : > { %1211 = vmatmul.mubr.msk.f32.vlgmr.msra.gmra.mrb[0].mxu1 %vm450_vm2, %v444_v15 }
  0x44   : > { %1200 = vmatmul.mubr.msk.f32.vlgmr.msra.gmra.mrb[0].mxu0 %vm450_vm2, %v443_v16  ;;  %1226 = vmatprep.mubr.msk.f32.mxu1 %vm1519_vm1, %v1520_v10 }
  0x45   : > { %1221 = vmatprep.mubr.msk.f32.mxu0 %vm1519_vm1, %v1520_v10  ;;  %1253 = vmatpush3.bf16.msra.mxu0 %v1252_v24 }
  0x46   : > { %1254 = vmatprep.subr.bf16.mxu0 %v1518_v4 }
  0x49   : > { %1256 = vmatpush3.bf16.msra.mxu0 %v1255_v26 }
  0x4a   : > { %1234 = vmatprep.subr.mxu0 %v1520_v10 }
  0x4c   : > { %1222 = vmatmul.mubr.msk.f32.vlgmr.msra.gmra.mrb[2].mxu0 %vm450_vm2, %v445_v27 }
  0x4d   : > { %1236 = vmatprep.mubr.msk.f32.mxu0 %vm1519_vm1, %v1520_v10  ;;  %1235 = vmatpush3.msra.mxu0 %v842_v39 }
 0x116   : > { %v597_v17 = vpop.f32.mrb[0].mxu1 }
 0x117   : > { %v1212_v18 = vpop.f32.mrb[1].mxu1  ;;  %1225 = vmatpush3.xpose.msk.msra.mxu1 %vm678_vm3, %v597_v17  ;;  %v520_v19 = vpop.f32.mrb[0].mxu0 }
 0x118   : > { %v1201_v20 = vpop.f32.mrb[1].mxu0  ;;  %1229 = vmatprep.subr.mxu1 %v1520_v10 }
 0x11a   : > { %1227 = vmatmul.mubr.msk.f32.vlgmr.msra.gmra.mrb[2].mxu1 %vm678_vm3, %v520_v19 }
 0x11b   : > { %1231 = vmatprep.mubr.msk.f32.mxu1 %vm1519_vm1, %v1520_v10 }
 0x11f   : > { %v674_v37 = vpop.f32.mrb[2].mxu0 }
 0x120   : > { %v1223_v38 = vpop.f32.mrb[3].mxu0  ;;  %1230 = vmatpush3.msra.mxu1 %v674_v37 }
 0x1ed   : > { %v751_v28 = vpop.f32.mrb[2].mxu1 }
 0x1ee   : > { %v755_v29 = vmul.f32 0.35355338, %v751_v28  ;;  %v1228_v30 = vpop.f32.mrb[3].mxu1 }
 0x1f0   : > { %v756_v31 = vsel %vm678_vm3, %v755_v29, -inf }
 0x1f1   : > { %757 = vmax.xlane.f32.xlu0 %v756_v31 }
 0x27e   : > { %v758_v32 = vpop.xlane.xlu0 %757 }
 0x27f   : > { %v759_v33 = vsub.f32 %v755_v29, %v758_v32 }
 0x281   : > { %v760_v34 = vmul.f32 1.442695, %v759_v33 }
 0x283   : > { %1361 = vpow2.f32 %v760_v34 }
 0x28d   : > { %v1362_v35 = vpop.eup %1361 }
 0x28e   : > { %v762_v36 = vsel %vm678_vm3, %v1362_v35, 0.0 }
 0x28f   : > { %763 = vadd.xlane.f32.xlu0 %v762_v36 }
 0x31c   : > { %v764_v40 = vpop.xlane.xlu0 %763 }
 0x31d   : > { %1363 = vrcp.f32 %v764_v40 }
 0x327   : > { %v1364_v41 = vpop.eup %1363 }
 0x328   : > { %v766_v42 = vmul.f32 %v1364_v41, %v1362_v35 }
 0x32a   : > { %767 = vst.msk [vmem:[%s405_s8] sm:$0xff] %vm678_vm3, %v766_v42  ;;  %1232 = vmatmul.mubr.msk.f32.vlgmr.msra.gmra.mrb[4].mxu1 %vm678_vm3, %v766_v42 }
 0x3fd   : > { %v837_v43 = vpop.f32.mrb[4].mxu1 }
 0x3fe   : > { %v1233_v44 = vpop.f32.mrb[5].mxu1  ;;  %1237 = vmatmul.mubr.msk.f32.vlgmr.msra.gmra.mrb[4].mxu0 %vm678_vm3, %v837_v43 }
 0x4ce   : > { %921 = sbr.rel (%p1159_p8) target bundleno = 1245 (0x4dd), region = 56 }
 0x4d1   : > { %v912_v46 = vpop.f32.mrb[4].mxu0 }
 0x4d2   : > { %v916_v47 = vadd.f32 %v912_v46, %v841_v45  ;;  %v1238_v48 = vpop.f32.mrb[5].mxu0 }
 0x4d4   : > { %917 = vst.msk [vmem:[#allocation2] sm:$0xff] %vm450_vm2, %v916_v47 }
 0x4db   : > { %v922_v49 = vld [vmem:[#allocation2] sm:$0xff] }
 0x4dc   : > { %923 = vst.msk [vmem:[%s398_s21] sm:$0xff] %vm450_vm2, %v922_v49 }
 0x4dd PF: > { %s1162_s18 = sshll.u32 %s1503_s12, 7  ;;  %s1924_s19 = sld [smem:[#allocation24_spill]] }
 0x4de   : > { %s943_s20 = sshll.u32 %s398_s21, 4  ;;  %s1925_s29 = sand.u32 1, %s1491_s9   ;;  %s944_s20 = int_to_ptr.vmem [resolvable:$true] %s943_s20 }
 0x4df   : > { %s925_s7 = scalar_lea.sflag [#allocation4], %s1925_s29  ;;  %s1365_s27 = scalar_lea.vmem %s944_s20, 128 }
 0x4e0   : > { %p1366_p9 = scmp.ne.s32.totalorder %s944_s20, %s1365_s27  ;;  %s1521_s28 = smov [#allocation3]  }
 0x4e1   : > { %s1369_s30 = sshll.u32 %s1521_s28, 4  ;;  %s1370_s30 = int_to_ptr.vmem [resolvable:$false] %s1369_s30 }
 0x4e2   : > { %p1367_p10 = pnand %p1366_p9, %p1639_p3  ;;  %s1371_s13 = scalar_lea.vmem %s1370_s30, 256 }
 0x4e3   : > { %s1780_s10 = scalar_lea.hbm %s1924_s19, %s1162_s18  ;;  %p1372_p0 = scmp.lt.s32.totalorder %s944_s20, %s1370_s30 }
 0x4e4   : > { %p1368_p11 = pneg %p1367_p10  ;;  %p1373_p1 = scmp.lt.s32.totalorder %s1371_s13, %s1365_s27 }
 0x4e6   : > { %p1374_p4 = por %p1373_p1, %p1372_p0 }
 0x4e8   : > { %p1375_p2 = pnand %p1374_p4, %p1368_p11 }
 0x4ea   : > { %1378 = shalt.err (!%p1375_p2)
}
 0x4eb   : > { %s1379_s23 = scalar_lea.hbm %s1780_s10, 128  ;;  %s1383_s26 = scalar_lea.hbm %s1924_s19, 256 }
 0x4ec   : > { %p1380_p5 = scmp.ne.s32.totalorder %s1780_s10, %s1379_s23  ;;  %p1384_p9 = scmp.lt.u32.totalorder %s1780_s10, %s1924_s19 }
 0x4ed   : > { %p1385_p10 = scmp.lt.u32.totalorder %s1383_s26, %s1379_s23  ;;  %p1387_p0 = scmp.lt.u32.totalorder %s1379_s23, %s1780_s10 }
 0x4ee   : > { %p1381_p6 = pnand %p1380_p5, %p1639_p3 }
 0x4ef   : > { %p1386_p11 = por %p1385_p10, %p1384_p9 }
 0x4f0   : > { %p1382_p8 = pneg %p1381_p6 }
 0x4f1   : > { %p1388_p1 = por %p1387_p0, %p1386_p11 }
 0x4f3   : > { %p1389_p4 = pnand %p1388_p1, %p1382_p8 }
 0x4f5   : > { %1392 = shalt.err (!%p1389_p4)
}
 0x4f6   : > { %s1926_s18 = sld [smem:[#allocation10_spill]]  ;;  %s1163_s14 = sshll.u32 %s1503_s12, 2 }
 0x4f7   : > { %1257 = dma.vmem_to_hbm [thread:$0]  (%p1639_p3), %s944_s20, 128, %s1780_s10, %s925_s7  }
 0x4f8   : > { %s958_s29 = sshll.u32 %s405_s8, 4  ;;  %s954_s27 = sadd.s32 %s1499_s11, %s1163_s14  ;;  %s1807_s29 = int_to_ptr.vmem [resolvable:$true] %s958_s29 }
 0x4f9   : > { %s1164_s28 = sshll.u32 %s954_s27, 7  ;;  %s1928_s22 = sld [smem:[#allocation25_spill]] }
 0x4fa   : > { %s1393_s26 = scalar_lea.vmem %s1807_s29, 128  ;;  %s1522_s12 = smov [#allocation5]  }
 0x4fb   : > { %p1394_p2 = scmp.ne.s32.totalorder %s1807_s29, %s1393_s26  ;;  %s1397_s8 = sshll.u32 %s1522_s12, 4  ;;  %s1398_s8 = int_to_ptr.vmem [resolvable:$false] %s1397_s8 }
 0x4fc   : > { %s1929_s21 = sand.u32 1, %s1926_s18   ;;  %s1399_s11 = scalar_lea.vmem %s1398_s8, 256 }
 0x4fd   : > { %s930_s15 = scalar_lea.sflag [#allocation6], %s1929_s21  ;;  %p1395_p3 = pnand %p1394_p2, %p1668_p12 }
 0x4fe   : > { %p1400_p6 = scmp.lt.s32.totalorder %s1807_s29, %s1398_s8  ;;  %p1401_p8 = scmp.lt.s32.totalorder %s1399_s11, %s1393_s26 }
 0x4ff   : > { %s956_s23 = scalar_lea.hbm %s1928_s22, %s1164_s28  ;;  %p1396_p5 = pneg %p1395_p3 }
 0x500   : > { %p1402_p9 = por %p1401_p8, %p1400_p6 }
 0x502   : > { %p1403_p10 = pnand %p1402_p9, %p1396_p5 }
 0x504   : > { %1406 = shalt.err (!%p1403_p10)
}
 0x505   : > { %s1407_s24 = scalar_lea.hbm %s956_s23, 128  ;;  %s1411_s7 = scalar_lea.hbm %s1928_s22, 1024 }
 0x506   : > { %p1408_p11 = scmp.ne.s32.totalorder %s956_s23, %s1407_s24  ;;  %p1412_p4 = scmp.lt.u32.totalorder %s956_s23, %s1928_s22 }
 0x507   : > { %p1413_p2 = scmp.lt.u32.totalorder %s1411_s7, %s1407_s24  ;;  %p1415_p13 = scmp.lt.u32.totalorder %s1407_s24, %s956_s23 }
 0x508   : > { %p1409_p0 = pnand %p1408_p11, %p1668_p12 }
 0x509   : > { %p1414_p3 = por %p1413_p2, %p1412_p4 }
 0x50a   : > { %p1410_p1 = pneg %p1409_p0 }
 0x50b   : > { %p1416_p6 = por %p1415_p13, %p1414_p3 }
 0x50d   : > { %p1417_p5 = pnand %p1416_p6, %p1410_p1 }
 0x50f   : > { %1420 = shalt.err (!%p1417_p5)
}
 0x510   : > { %1258 = dma.vmem_to_hbm [thread:$0]  (%p1668_p12), %s1807_s29, 128, %s956_s23, %s930_s15  }
 0x511 PF: > { %s1930_s18 = sld [smem:[#allocation16_spill]]  ;;  %s1931_s14 = sld [smem:[#allocation12_spill]] }
 0x517   : > { %p1268_p8 = scmp.ge.s32.totalorder %s1930_s18, 2  ;;  %s970_s28 = sand.u32 1, %s1931_s14  }
 0x518   : > { %s971_s30 = scalar_lea.sflag [#allocation4], %s970_s28 }
 0x519   : > { %p1262_p9 = pnand %p1268_p8, %p1656_p7 }
 0x51b   : > { %1466 = dma.done.wait (!%p1262_p9), %s971_s30, 128  }
 0x51c   : > { %1468 = vsyncadd (!%p1262_p9), %s971_s30, 4294967168  ;;  %s1933_s13 = sld [smem:[#allocation9_spill]]  ;;  %s1934_s21 = sld [smem:[#allocation23_spill]] }
 0x522   : > { %s979_s26 = sand.u32 1, %s1933_s13   ;;  %p1935_p13 = scmp.ne.s32.totalorder %s1934_s21, 0 }
 0x523   : > { %s980_s12 = scalar_lea.sflag [#allocation6], %s979_s26 }
 0x524   : > { %p1265_p10 = pnand %p1268_p8, %p1935_p13 }
 0x526   : > { %1470 = dma.done.wait (!%p1265_p10), %s980_s12, 128  }
 0x527   : > { %1472 = vsyncadd (!%p1265_p10), %s980_s12, 4294967168  ;;  %s25_s15 = sadd.s32 1, %s1930_s18   ;;  %s1936_s27 = sld [smem:[#allocation10_spill]] }
 0x528   : > { %p22_p12 = scmp.ge.s32.totalorder %s25_s15, 10   ;;  %s1937_s28 = sld [smem:[#allocation11_spill]] }
 0x529   : > { %s1938_s29 = sld [smem:[#allocation22_spill]]  ;;  %s1939_s17 = sld [smem:[#allocation13_spill]] }
 0x52a   : > { %s1940_s10 = sld [smem:[#allocation21_spill]]  ;;  %s1941_s11 = sld [smem:[#allocation14_spill]] }
 0x52b   : > { %s1942_s12 = sld [smem:[#allocation15_spill]]  ;;  %s1943_s13 = sld [smem:[#allocation17_spill]] }
 0x52c   : > { %s1944_s14 = sld [smem:[#allocation18_spill]]  ;;  %s1945_s30 = smov %s1491_s9 }
 0x52d   :  { %24 = sbr.rel (!%p22_p12) target bundleno = 12 (0xc), region = 126 }
 0x52f   : > { %s1946_s9 = smov %s1939_s17 }
 0x534   :  { %985 = vsyncpa [#allocation4], 1 }
 0x535   :  { %987 = vsyncpa [#allocation4 + $0x1], 1 }
 0x536   :  { %988 = vsyncpa [#allocation6], 1 }
 0x537   :  { %990 = vsyncpa [#allocation6 + $0x1], 1 }

</bundles_post_ra>
